<compile_context>
chip_gen: v5e
topology: v5e:2x2
jax: 0.10.0
libtpu: 0.0.40
codegen_flags: <defaults>
</compile_context>

<pallas_src>
import jax
import jax.numpy as jnp
from jax import lax
from jax.experimental import pallas as pl
from jax.experimental.pallas import tpu as pltpu

_EPS = 1e-5        # nn.BatchNorm2d default eps
_ACC_W = 512       # target per-lane accumulator width (lanes)


# ----------------------------------------------------------------------------
# Generation-aware budgets
# ----------------------------------------------------------------------------
def _tpu_vmem_capacity():
    try:
        info = pltpu.get_tpu_info()
        for attr in ("vmem_capacity_bytes", "vmem_size_bytes", "vmem_bytes"):
            v = getattr(info, attr, None)
            if v:
                return int(v)
    except Exception:
        pass
    return 64 << 20  # conservative default (v7x per-TC VMEM)


def _vmem_limit_bytes(cap, blocks_bytes, scratch_bytes):
    # double-buffered pipeline blocks + resident scratch + compiler headroom,
    # clamped to ~75% of physical VMEM (footprint-based, not a flat cap).
    need = 2 * blocks_bytes + scratch_bytes + (4 << 20)
    hi = max(cap * 3 // 4, 32 << 20)
    return int(min(max(need, 16 << 20), hi))


# ----------------------------------------------------------------------------
# Tiling: (bn images per block, spatial tile T, padded HW)
# ----------------------------------------------------------------------------
def _pick_tiling(n, c, hw, itemsize, block_budget):
    col = c * max(itemsize, 4)  # bytes per spatial column (fp32-ish estimate)
    # Case A: whole spatial extent fits one block -> pack several images per
    # grid step to amortize the ~0.35 us fixed per-step overhead.
    if hw * col <= block_budget:
        bn = 1
        for cand in range(min(n, max(1, block_budget // (hw * col))), 0, -1):
            if n % cand == 0:
                bn = cand
                break
        return bn, hw, hw
    # Case B: large spatial extent -> lane-dense tile that divides HW.
    for t in (2048, 1024, 512, 256, 128):
        if hw % t == 0 and t * col <= block_budget:
            return 1, t, hw
    # Case C: HW not tileable (non-128-divisible and too big for one block):
    # pad up to a lane-aligned multiple so VMEM blocks stay bounded and the
    # pipeline keeps double-buffering (zero padding is sum/sumsq-neutral;
    # the pass-2 output is sliced back to HW).
    t = 512
    while t > 128 and t * col > block_budget:
        t //= 2
    hw_pad = ((hw + t - 1) // t) * t
    return 1, t, hw_pad


# ----------------------------------------------------------------------------
# Pass 1: per-batch-group, per-channel sum / sum-of-squares partials.
# ----------------------------------------------------------------------------
def _stats_kernel(x_ref, sum_ref, sumsq_ref, acc_sum, acc_sq):
    # x_ref:              (bn, C, T) tile of the (N, C, HWp) view (input dtype)
    # sum_ref / sumsq_ref:(1, C, 1) per-batch-group partial outputs (fp32)
    # acc_sum / acc_sq:   (C, ACC_W) fp32 per-lane partial accumulators
    j = pl.program_id(1)

    @pl.when(j == 0)
    def _init():
        acc_sum[...] = jnp.zeros_like(acc_sum)
        acc_sq[...] = jnp.zeros_like(acc_sq)

    t = x_ref.shape[-1]
    acc_w = acc_sum.shape[-1]
    # Fold the (bn, C, T) tile down to (C, acc_w): batch-dim adds and
    # lane-offset chunk adds are plain VPU work (no XLU) and cut the
    # accumulator read-modify-write traffic by T/acc_w while keeping scratch
    # fixed-size regardless of the tile width.
    for k in range(t // acc_w):  # static, small (<= 4)
        xc = x_ref[:, :, k * acc_w:(k + 1) * acc_w].astype(jnp.float32)
        acc_sum[...] += jnp.sum(xc, axis=0)
        acc_sq[...] += jnp.sum(xc * xc, axis=0)

    @pl.when(j == pl.num_programs(1) - 1)
    def _finalize():
        # Single cross-lane (XLU) reduce per batch group, at the phase boundary.
        sum_ref[0] = jnp.sum(acc_sum[...], axis=1, keepdims=True)    # (C, 1)
        sumsq_ref[0] = jnp.sum(acc_sq[...], axis=1, keepdims=True)   # (C, 1)


# ----------------------------------------------------------------------------
# Pass 2: gated output, out = sigmoid(a*x + b) * x with folded per-channel a/b.
# ----------------------------------------------------------------------------
def _gate_kernel(scale_ref, bias_ref, x_ref, o_ref):
    # scale_ref / bias_ref: (C, 1) fp32 (broadcast along batch-block and lanes)
    # x_ref / o_ref:        (bn, C, T) tiles, original dtype
    x = x_ref[...].astype(jnp.float32)
    a = scale_ref[...]
    b = bias_ref[...]
    o_ref[...] = (jax.nn.sigmoid(a * x + b) * x).astype(o_ref.dtype)


# ----------------------------------------------------------------------------
# Wrapper
# ----------------------------------------------------------------------------
def channel_att(x_nchw, gamma, beta, *, block_budget=None, donate_x=False):
    """Channel_Att forward. x_nchw: (N, C, H, W); gamma/beta: (C,)."""
    n, c, h, w = x_nchw.shape
    hw = h * w
    m = n * hw

    cap = _tpu_vmem_capacity()
    if block_budget is None:
        # 128 MiB-class (v5e/v6e): larger lane-dense tiles toward the HBM
        # roofline; 64 MiB-class (v7x): keep blocks modest.
        block_budget = (8 << 20) if cap >= (96 << 20) else (4 << 20)

    # Pure reshape -- no transpose, no extra HBM pass.
    x3 = x_nchw.reshape(n, c, hw)
    itemsize = x3.dtype.itemsize
    bn, t, hw_pad = _pick_tiling(n, c, hw, itemsize, block_budget)
    if hw_pad != hw:
        x3 = jnp.pad(x3, ((0, 0), (0, 0), (0, hw_pad - hw)))

    nb = n // bn
    grid = (nb, hw_pad // t)
    acc_w = _ACC_W if t % _ACC_W == 0 else t
    in_block_bytes = bn * c * t * itemsize
    scratch_bytes = 2 * c * acc_w * 4

    # ---- pass 1: per-batch-group partial statistics --------------------------
    # Batch-group axis "parallel" (megacore-shardable on v7x), spatial axis is
    # the reduction ("arbitrary", last).  Accumulators are (re)initialized at
    # j==0 and finalized at j==last for every i, so sharding i is safe.
    # (Optional knob: pipeline_mode=pl.Buffered(3) on the input spec if a
    # profile ever shows exposed DMA at depth 2.)
    vlim1 = _vmem_limit_bytes(cap, in_block_bytes + 2 * c * 4, scratch_bytes)
    sum_x, sum_xx = pl.pallas_call(
        _stats_kernel,
        out_shape=(jax.ShapeDtypeStruct((nb, c, 1), jnp.float32),
                   jax.ShapeDtypeStruct((nb, c, 1), jnp.float32)),
        grid=grid,
        in_specs=[pl.BlockSpec((bn, c, t), lambda i, j: (i, 0, j))],
        out_specs=(pl.BlockSpec((1, c, 1), lambda i, j: (i, 0, 0)),
                   pl.BlockSpec((1, c, 1), lambda i, j: (i, 0, 0))),
        scratch_shapes=[pltpu.VMEM((c, acc_w), jnp.float32),
                        pltpu.VMEM((c, acc_w), jnp.float32)],
        compiler_params=pltpu.CompilerParams(
            dimension_semantics=("parallel", "arbitrary"),
            vmem_limit_bytes=vlim1),
    )(x3)

    # ---- tiny O(N*C + C) combine + BN/attention-weight fold (wrapper) -------
    # Kept outside the kernel so pass 1 stays per-batch-group (shardable);
    # this is a handful of vector ops on (C,) data, computed exactly once.
    sum_c = jnp.sum(sum_x[:, :, 0], axis=0)      # (C,)
    sumsq_c = jnp.sum(sum_xx[:, :, 0], axis=0)   # (C,)
    inv_m = 1.0 / float(m)
    mean = sum_c * inv_m
    var = jnp.maximum(sumsq_c * inv_m - mean * mean, 0.0)
    inv_std = lax.rsqrt(var + _EPS)

    g = gamma.astype(jnp.float32)
    bta = beta.astype(jnp.float32)
    w_att = jnp.abs(g) / jnp.sum(jnp.abs(g))
    scale = (g * inv_std * w_att).reshape(c, 1)                   # a
    bias = ((bta - g * mean * inv_std) * w_att).reshape(c, 1)     # b

    # ---- pass 2: gated output (lane-dense, fully parallel, orig dtype) ------
    vlim2 = _vmem_limit_bytes(cap, 2 * in_block_bytes + 2 * c * 4, 0)
    out3 = pl.pallas_call(
        _gate_kernel,
        out_shape=jax.ShapeDtypeStruct((n, c, hw_pad), x3.dtype),
        grid=grid,
        in_specs=[pl.BlockSpec((c, 1), lambda i, j: (0, 0)),
                  pl.BlockSpec((c, 1), lambda i, j: (0, 0)),
                  pl.BlockSpec((bn, c, t), lambda i, j: (i, 0, j))],
        out_specs=pl.BlockSpec((bn, c, t), lambda i, j: (i, 0, j)),
        input_output_aliases=({2: 0} if donate_x else {}),
        compiler_params=pltpu.CompilerParams(
            dimension_semantics=("parallel", "parallel"),
            vmem_limit_bytes=vlim2),
    )(scale, bias, x3)

    if hw_pad != hw:
        out3 = out3[:, :, :hw]
    return out3.reshape(n, c, h, w)


# ----------------------------------------------------------------------------
# Pure-JAX reference mirroring the PyTorch forward (training-mode BN).
# ----------------------------------------------------------------------------
def _reference(x_nchw, gamma, beta):
    mean = jnp.mean(x_nchw, axis=(0, 2, 3), keepdims=True)
    var = jnp.mean((x_nchw - mean) ** 2, axis=(0, 2, 3), keepdims=True)
    g = gamma.reshape(1, -1, 1, 1)
    b = beta.reshape(1, -1, 1, 1)
    y = g * (x_nchw - mean) / jnp.sqrt(var + _EPS) + b
    w = jnp.abs(gamma) / jnp.sum(jnp.abs(gamma))
    y = y * w.reshape(1, -1, 1, 1)
    return jax.nn.sigmoid(y) * x_nchw


if __name__ == "__main__":
    key = jax.random.PRNGKey(0)
    kx, kg, kb = jax.random.split(key, 3)

    # Primary small test (batch-blocked whole-row path).
    N, C, H, W = 2, 4, 16, 16
    x = jax.random.normal(kx, (N, C, H, W), dtype=jnp.float32)
    gamma = jax.random.normal(kg, (C,), dtype=jnp.float32) + 1.0
    beta = 0.1 * jax.random.normal(kb, (C,), dtype=jnp.float32)

    out = jax.block_until_ready(channel_att(x, gamma, beta))
    assert out.shape == (N, C, H, W)
    assert jnp.allclose(out, _reference(x, gamma, beta), atol=2e-5, rtol=2e-5)

    # Spatial-tiled path with accumulator folding (forced via a tiny budget):
    # hw=2048 -> t=1024, acc_w=512, 2 lane-fold chunks, grid (2, 2).
    x_b = jax.random.normal(kx, (2, 8, 32, 64), dtype=jnp.float32)
    g_b = jax.random.normal(kg, (8,), dtype=jnp.float32) + 1.0
    b_b = 0.1 * jax.random.normal(kb, (8,), dtype=jnp.float32)
    out_b = jax.block_until_ready(channel_att(x_b, g_b, b_b, block_budget=32 << 10))
    assert jnp.allclose(out_b, _reference(x_b, g_b, b_b), atol=2e-5, rtol=2e-5)

    # Non-128-divisible large HW -> lane-aligned padding path:
    # hw=900 -> t=256, hw_pad=1024, grid (2, 4), output sliced back.
    x_c = jax.random.normal(kx, (2, 8, 30, 30), dtype=jnp.float32)
    out_c = jax.block_until_ready(channel_att(x_c, g_b, b_b, block_budget=8 << 10))
    assert jnp.allclose(out_c, _reference(x_c, g_b, b_b), atol=2e-5, rtol=2e-5)

    # Small non-128-divisible HW: full-row block with batch blocking (bn=2).
    x_a = jax.random.normal(kx, (2, C, 10, 10), dtype=jnp.float32)
    out_a = jax.block_until_ready(channel_att(x_a, gamma, beta))
    assert jnp.allclose(out_a, _reference(x_a, gamma, beta), atol=2e-5, rtol=2e-5)

    print("KERNEL_OK")
</pallas_src>

<mosaic_0001>
module attributes {stable_mosaic.version = 11 : i64} {
  func.func @_stats_kernel(%arg0: i32, %arg1: i32, %arg2: memref<2x4x256xf32, #tpu.memory_space<vmem>>, %arg3: memref<1x4x1xf32, #tpu.memory_space<vmem>>, %arg4: memref<1x4x1xf32, #tpu.memory_space<vmem>>, %arg5: memref<4x256xf32, #tpu.memory_space<vmem>>, %arg6: memref<4x256xf32, #tpu.memory_space<vmem>>) attributes {dimension_semantics = [#tpu.dimension_semantics<parallel>, #tpu.dimension_semantics<arbitrary>], iteration_bounds = array<i64: 1, 1>, scalar_prefetch = 0 : i64, scratch_operands = 2 : i64, tpu.core_type = #tpu.core_type<tc>, window_params = [{transform_indices = @transform_0, window_bounds = array<i64: 2, 4, 256>}, {transform_indices = @transform_1, window_bounds = array<i64: 1, 4, 1>}, {transform_indices = @transform_2, window_bounds = array<i64: 1, 4, 1>}]} {
    %c0_i32 = arith.constant 0 : i32
    %0 = arith.cmpi eq, %arg1, %c0_i32 : i32
    %1 = arith.extui %0 : i1 to i32
    %c0_i32_0 = arith.constant 0 : i32
    %2 = arith.cmpi ne, %1, %c0_i32_0 : i32
    scf.if %2 {
      %cst_14 = arith.constant 0.000000e+00 : f32
      %16 = vector.broadcast %cst_14 : f32 to vector<4x256xf32>
      %c0_15 = arith.constant 0 : index
      %c0_16 = arith.constant 0 : index
      %17 = vector.load %arg5[%c0_15, %c0_16] : memref<4x256xf32, #tpu.memory_space<vmem>>, vector<4x256xf32>
      tpu.vector_store %arg5[%c0_15, %c0_16], %16 {strides = array<i32>} : memref<4x256xf32, #tpu.memory_space<vmem>>, vector<4x256xf32>,
      %cst_17 = arith.constant 0.000000e+00 : f32
      %18 = vector.broadcast %cst_17 : f32 to vector<4x256xf32>
      %c0_18 = arith.constant 0 : index
      %c0_19 = arith.constant 0 : index
      %19 = vector.load %arg6[%c0_18, %c0_19] : memref<4x256xf32, #tpu.memory_space<vmem>>, vector<4x256xf32>
      tpu.vector_store %arg6[%c0_18, %c0_19], %18 {strides = array<i32>} : memref<4x256xf32, #tpu.memory_space<vmem>>, vector<4x256xf32>,
    } else {
    }
    %c0 = arith.constant 0 : index
    %c0_1 = arith.constant 0 : index
    %c0_2 = arith.constant 0 : index
    %3 = vector.load %arg2[%c0, %c0_1, %c0_2] : memref<2x4x256xf32, #tpu.memory_space<vmem>>, vector<2x4x256xf32>
    %c0_3 = arith.constant 0 : index
    %c0_4 = arith.constant 0 : index
    %4 = vector.load %arg5[%c0_3, %c0_4] : memref<4x256xf32, #tpu.memory_space<vmem>>, vector<4x256xf32>
    %cst = arith.constant dense<0.000000e+00> : vector<4x256xf32>
    %5 = vector.multi_reduction <add>, %3, %cst [0] : vector<2x4x256xf32> to vector<4x256xf32>
    %6 = arith.addf %4, %5 : vector<4x256xf32>
    %c0_5 = arith.constant 0 : index
    %c0_6 = arith.constant 0 : index
    %7 = vector.load %arg5[%c0_5, %c0_6] : memref<4x256xf32, #tpu.memory_space<vmem>>, vector<4x256xf32>
    tpu.vector_store %arg5[%c0_5, %c0_6], %6 {strides = array<i32>} : memref<4x256xf32, #tpu.memory_space<vmem>>, vector<4x256xf32>,
    %c0_7 = arith.constant 0 : index
    %c0_8 = arith.constant 0 : index
    %8 = vector.load %arg6[%c0_7, %c0_8] : memref<4x256xf32, #tpu.memory_space<vmem>>, vector<4x256xf32>
    %9 = arith.mulf %3, %3 : vector<2x4x256xf32>
    %cst_9 = arith.constant dense<0.000000e+00> : vector<4x256xf32>
    %10 = vector.multi_reduction <add>, %9, %cst_9 [0] : vector<2x4x256xf32> to vector<4x256xf32>
    %11 = arith.addf %8, %10 : vector<4x256xf32>
    %c0_10 = arith.constant 0 : index
    %c0_11 = arith.constant 0 : index
    %12 = vector.load %arg6[%c0_10, %c0_11] : memref<4x256xf32, #tpu.memory_space<vmem>>, vector<4x256xf32>
    tpu.vector_store %arg6[%c0_10, %c0_11], %11 {strides = array<i32>} : memref<4x256xf32, #tpu.memory_space<vmem>>, vector<4x256xf32>,
    %c0_i32_12 = arith.constant 0 : i32
    %13 = arith.cmpi eq, %arg1, %c0_i32_12 : i32
    %14 = arith.extui %13 : i1 to i32
    %c0_i32_13 = arith.constant 0 : i32
    %15 = arith.cmpi ne, %14, %c0_i32_13 : i32
    scf.if %15 {
      %c0_14 = arith.constant 0 : index
      %c0_15 = arith.constant 0 : index
      %16 = vector.load %arg5[%c0_14, %c0_15] : memref<4x256xf32, #tpu.memory_space<vmem>>, vector<4x256xf32>
      %cst_16 = arith.constant dense<0.000000e+00> : vector<4xf32>
      %17 = vector.multi_reduction <add>, %16, %cst_16 [1] : vector<4x256xf32> to vector<4xf32>
      %18 = vector.shape_cast %17 : vector<4xf32> to vector<4x1xf32>
      %c0_17 = arith.constant 0 : index
      %c0_18 = arith.constant 0 : index
      %c0_19 = arith.constant 0 : index
      %19 = vector.load %arg3[%c0_17, %c0_18, %c0_19] : memref<1x4x1xf32, #tpu.memory_space<vmem>>, vector<1x4x1xf32>
      %20 = vector.shape_cast %19 : vector<1x4x1xf32> to vector<4x1xf32>
      %21 = vector.shape_cast %18 : vector<4x1xf32> to vector<1x4x1xf32>
      tpu.vector_store %arg3[%c0_17, %c0_18, %c0_19], %21 {strides = array<i32>} : memref<1x4x1xf32, #tpu.memory_space<vmem>>, vector<1x4x1xf32>,
      %c0_20 = arith.constant 0 : index
      %c0_21 = arith.constant 0 : index
      %22 = vector.load %arg6[%c0_20, %c0_21] : memref<4x256xf32, #tpu.memory_space<vmem>>, vector<4x256xf32>
      %cst_22 = arith.constant dense<0.000000e+00> : vector<4xf32>
      %23 = vector.multi_reduction <add>, %22, %cst_22 [1] : vector<4x256xf32> to vector<4xf32>
      %24 = vector.shape_cast %23 : vector<4xf32> to vector<4x1xf32>
      %c0_23 = arith.constant 0 : index
      %c0_24 = arith.constant 0 : index
      %c0_25 = arith.constant 0 : index
      %25 = vector.load %arg4[%c0_23, %c0_24, %c0_25] : memref<1x4x1xf32, #tpu.memory_space<vmem>>, vector<1x4x1xf32>
      %26 = vector.shape_cast %25 : vector<1x4x1xf32> to vector<4x1xf32>
      %27 = vector.shape_cast %24 : vector<4x1xf32> to vector<1x4x1xf32>
      tpu.vector_store %arg4[%c0_23, %c0_24, %c0_25], %27 {strides = array<i32>} : memref<1x4x1xf32, #tpu.memory_space<vmem>>, vector<1x4x1xf32>,
    } else {
    }
    return
  }
  func.func @transform_0(%arg0: i32, %arg1: i32) -> (i32, i32, i32) {
    %c0_i32 = arith.constant 0 : i32
    %c0_i32_0 = arith.constant 0 : i32
    return %arg0, %c0_i32, %arg1 : i32, i32, i32
  }
  func.func @transform_1(%arg0: i32, %arg1: i32) -> (i32, i32, i32) {
    %c0_i32 = arith.constant 0 : i32
    %c0_i32_0 = arith.constant 0 : i32
    %c0_i32_1 = arith.constant 0 : i32
    return %arg0, %c0_i32, %c0_i32_0 : i32, i32, i32
  }
  func.func @transform_2(%arg0: i32, %arg1: i32) -> (i32, i32, i32) {
    %c0_i32 = arith.constant 0 : i32
    %c0_i32_0 = arith.constant 0 : i32
    %c0_i32_1 = arith.constant 0 : i32
    return %arg0, %c0_i32, %c0_i32_0 : i32, i32, i32
  }
}

</mosaic_0001>

<bundles_post_ra>
// kernel: tpu_custom_call.1
= control target key start
LH: loop header
LB: loop body
LE: loop exit
PB: predicated region body
PF: predicated region fallthrough
CT: control target
= control target key end

     0   :  { %8 = vsyncpa [#allocation5], 0  ;;  %s159_s12 = smov [#allocation4]   ;;  %s160_s14 = smov 128   ;;  %s200_s0 = inlined_call_operand.hbm [shape: f32[2,4,256], index: 0, kind: input, shape index: {}]   ;;  %s201_s1 = inlined_call_operand.vmem [shape: f32[1,4,1], index: 1, kind: output, shape index: {0}]   ;;  %s202_s2 = inlined_call_operand.vmem [shape: f32[1,4,1], index: 2, kind: output, shape index: {1}]  }
   0x1   :  { %s13_s11 = sshll.u32 %s200_s0, 4  ;;  %s15_s13 = sshll.u32 %s159_s12, 4  ;;  %s14_s11 = int_to_ptr.hbm [resolvable:$true] %s13_s11  ;;  %s16_s13 = int_to_ptr.vmem [resolvable:$true] %s15_s13 }
   0x2   :  { %s161_s15 = smov 8  }
   0x3   :  { %21 = dma.hbm_to_vmem [thread:$0]  %s14_s11, 256, %s16_s13, [#allocation5], %s160_s14, %s160_s14, %s161_s15  }
   0x4   :  { %157 = dma.done.wait [#allocation5], 256  }
   0x5   :  { %158 = vsyncadd [#allocation5], 4294967040  ;;  %v32_v0 = vld [vmem:[#allocation4] sm:$0xff]  ;;  %v33_v1 = vld [vmem:[#allocation4 + $0x8] sm:$0xff]  ;;  %vm48_vm0 = vcmask 1043456   ;;  %vm106_vm1 = vcmask 3072  }
   0x6   :  { %37 = vst [vmem:[#allocation1] ss:$2 sm:$0xff] %v32_v0  ;;  %v63_v2 = vmul.f32 %v32_v0, %v32_v0  ;;  %v64_v3 = vmul.f32 %v33_v1, %v33_v1 }
   0x7   :  { %41 = vst [vmem:[#allocation1 + $0x10] ss:$2 sm:$0xff] %v33_v1 }
   0xd   :  { %v38_v4 = vld.sshfl [vmem:[#allocation1] sm:$0xff pattern:$0x75316420]  ;;  %v39_v5 = vld.sshfl [vmem:[#allocation1 + $0x8] sm:$0xff pattern:$0x75316420] }
   0xe   :  { %v42_v6 = vld.sshfl [vmem:[#allocation1 + $0x10] sm:$0xff pattern:$0x75316420]  ;;  %v43_v7 = vld.sshfl [vmem:[#allocation1 + $0x18] sm:$0xff pattern:$0x75316420] }
   0xf   :  { %v49_v8 = vsel %vm48_vm0, %v38_v4, 0.0  ;;  %v50_v9 = vsel %vm48_vm0, %v42_v6, 0.0  ;;  %v52_v10 = vsel %vm48_vm0, %v39_v5, 0.0  ;;  %v53_v11 = vsel %vm48_vm0, %v43_v7, 0.0  ;;  %67 = vst [vmem:[#allocation1] ss:$2 sm:$0xff] %v63_v2 }
  0x10   :  { %v54_v12 = vadd.f32 %v53_v11, %v52_v10  ;;  %71 = vst [vmem:[#allocation1 + $0x10] ss:$2 sm:$0xff] %v64_v3  ;;  %v51_v13 = vadd.f32 %v50_v9, %v49_v8 }
  0x12   :  { %v57_v14 = vrot.slane %v54_v12, 4 }
  0x14   :  { %v58_v15 = vsel %vm48_vm0, %v51_v13, %v57_v14 }
  0x16   :  { %v68_v16 = vld.sshfl [vmem:[#allocation1] sm:$0xff pattern:$0x75316420]  ;;  %v69_v17 = vld.sshfl [vmem:[#allocation1 + $0x8] sm:$0xff pattern:$0x75316420] }
  0x17   :  { %v72_v18 = vld.sshfl [vmem:[#allocation1 + $0x10] sm:$0xff pattern:$0x75316420]  ;;  %v73_v19 = vld.sshfl [vmem:[#allocation1 + $0x18] sm:$0xff pattern:$0x75316420] }
  0x18   :  { %v78_v20 = vsel %vm48_vm0, %v68_v16, 0.0  ;;  %v79_v21 = vsel %vm48_vm0, %v72_v18, 0.0  ;;  %v81_v22 = vsel %vm48_vm0, %v69_v17, 0.0  ;;  %v82_v23 = vsel %vm48_vm0, %v73_v19, 0.0  ;;  %96 = vst [vmem:[#allocation1] ss:$2 sm:$0xff] %v58_v15 }
  0x19   :  { %v80_v24 = vadd.f32 %v79_v21, %v78_v20  ;;  %v83_v25 = vadd.f32 %v82_v23, %v81_v22 }
  0x1b   :  { %v86_v26 = vrot.slane %v83_v25, 4 }
  0x1d   :  { %v87_v27 = vsel %vm48_vm0, %v80_v24, %v86_v26 }
  0x1f   :  { %v97_v28 = vld.sshfl [vmem:[#allocation1] sm:$0xff pattern:$0x75316420]  ;;  %v98_v29 = vld.sshfl [vmem:[#allocation1 + $0x8] sm:$0xff pattern:$0x75316420] }
  0x20   :  { %v101_v30 = vsel %vm48_vm0, %v97_v28, 0.0  ;;  %v102_v31 = vsel %vm48_vm0, %v98_v29, 0.0  ;;  %110 = vst [vmem:[#allocation1] ss:$2 sm:$0xff] %v87_v27 }
  0x21   :  { %v103_v32 = vadd.f32 %v102_v31, %v101_v30 }
  0x23   :  { %104 = vadd.xlane.f32.xlu0 %v103_v32 }
  0x27   :  { %v111_v33 = vld.sshfl [vmem:[#allocation1] sm:$0xff pattern:$0x75316420]  ;;  %v112_v34 = vld.sshfl [vmem:[#allocation1 + $0x8] sm:$0xff pattern:$0x75316420] }
  0x28   :  { %v115_v35 = vsel %vm48_vm0, %v111_v33, 0.0  ;;  %v116_v36 = vsel %vm48_vm0, %v112_v34, 0.0 }
  0x29   :  { %v117_v37 = vadd.f32 %v116_v36, %v115_v35 }
  0x2b   :  { %118 = vadd.xlane.f32.xlu0 %v117_v37 }
  0x96   :  { %v105_v38 = vpop.xlane.xlu0 %104 }
  0x97   :  { %107 = vst.msk [vmem:[%s201_s1] sm:$0xf] %vm106_vm1, %v105_v38 }
  0x9e   :  { %v119_v39 = vpop.xlane.xlu0 %118 }
  0x9f   :  { %120 = vst.msk [vmem:[%s202_s2] sm:$0xf] %vm106_vm1, %v119_v39 }
  0xa0   :  { %129 = vsyncpa [#allocation5], 1 }

</bundles_post_ra>
